<compile_context>
chip_gen: v5e
topology: v5e:2x2
jax: 0.10.0
libtpu: 0.0.40
codegen_flags: <defaults>
</compile_context>

<pallas_src>
import functools

import jax
import jax.numpy as jnp
from jax.experimental import pallas as pl
from jax.experimental.pallas import tpu as pltpu

WINDOW_SIZES = (1, 2, 3, 4, 5)
W_MAX = max(WINDOW_SIZES)


def bert_cnn_kernel(x_ref, bigw_ref, bias_ref, mask_ref, wout_ref, bout_ref,
                    out_ref, *, seq_len):
    """Fused conv(all windows) + bias + ReLU + masked max-pool + output Linear.

    x_ref    : (B_tile, S_pad, C*H)   f32, lane-dense (C*H == 128)
    bigw_ref : (W_MAX*C*H, NW*OC)     bf16, all conv weights fused (zero-padded)
    bias_ref : (1, NW*OC)             f32, concatenated conv biases
    mask_ref : (seq_len, NW*OC)       f32, 0 on valid positions, -1e30 past L_w
    wout_ref : (NW*OC, num_classes)   bf16
    bout_ref : (1, num_classes)       f32
    out_ref  : (B_tile, num_classes)  f32
    """
    xp = x_ref[...]                                   # (B_tile, S_pad, 128) f32
    bt = xp.shape[0]
    ch = xp.shape[2]

    # im2col: the contribution at seq position s from window offset dw comes from
    # x[:, s + dw, :].  Static sublane shifts + lane-axis concat (each chunk is
    # exactly one vreg lane-width) build a (B*S, W_MAX*C*H) slab.
    slab = jnp.concatenate(
        [xp[:, dw:dw + seq_len, :] for dw in range(W_MAX)], axis=-1)
    slab2d = slab.reshape(bt * seq_len, W_MAX * ch).astype(bigw_ref.dtype)

    # One MXU matmul for all 5 convolutions (K = W_MAX*C*H, N = 5*OC), f32 accum.
    acc = jnp.dot(slab2d, bigw_ref[...], preferred_element_type=jnp.float32)
    acc = acc.reshape(bt, seq_len, -1)                # (B_tile, S, NW*OC) f32

    acc = jnp.maximum(acc + bias_ref[...], 0.0)       # bias + ReLU (VPU, f32)
    acc = acc + mask_ref[...]                         # mask positions >= S - w + 1
    pooled = jnp.max(acc, axis=1)                     # max-over-time -> (B_tile, NW*OC)

    # Dropout: identity in eval mode.  Output Linear on the already-concatenated
    # (window-major, channel-minor) feature layout -> single dot.
    logits = jnp.dot(pooled.astype(wout_ref.dtype), wout_ref[...],
                     preferred_element_type=jnp.float32) + bout_ref[...]
    out_ref[...] = logits.astype(out_ref.dtype)


def bert_cnn_forward(x, conv_ws, conv_bs, w_out, b_out, *, batch_tile=8):
    """x: (B, C, S, H) stacked last-4 BERT hidden states; conv_ws[i]: (OC, C, w_i, H)
    PyTorch OIHW; conv_bs[i]: (1, OC); w_out: (NW*OC, NC); b_out: (1, NC)."""
    B, C, S, H = x.shape
    OC = conv_ws[0].shape[0]
    NW = len(WINDOW_SIZES)
    NC = w_out.shape[1]
    CH = C * H

    # -------- wrapper-side layout plumbing (one-time XLA ops, not in kernel) ------
    # x -> lane-dense (B, S, C*H), zero-padded along S so every window shift is an
    # in-bounds static slice, and padded along B to the batch tile.
    s_pad = -(-(S + W_MAX - 1) // 8) * 8
    bt = batch_tile if B > batch_tile else B          # bt == B or multiple of 8
    b_pad = -(-B // bt) * bt
    x_l = x.transpose(0, 2, 1, 3).reshape(B, S, CH).astype(jnp.float32)
    x_l = jnp.pad(x_l, ((0, b_pad - B), (0, s_pad - S), (0, 0)))

    # Fuse all conv weights into one (W_MAX*C*H, NW*OC) matrix.  OIHW ->
    # (dw, c, h, oc), row index = dw*C*H + c*H + h, zero-padded to dw = W_MAX.
    blocks = []
    for w, wgt in zip(WINDOW_SIZES, conv_ws):
        k = wgt.transpose(2, 1, 3, 0).reshape(w * CH, OC)
        blocks.append(jnp.pad(k, ((0, (W_MAX - w) * CH), (0, 0))))
    big_w = jnp.concatenate(blocks, axis=1).astype(jnp.bfloat16)   # (W_MAX*CH, NW*OC)

    bias = jnp.concatenate(conv_bs, axis=1).astype(jnp.float32)    # (1, NW*OC)

    # Validity mask: window w contributes only at positions s < S - w + 1.
    limits = jnp.concatenate(
        [jnp.full((OC,), S - w + 1, jnp.int32) for w in WINDOW_SIZES])
    neg_mask = jnp.where(
        jnp.arange(S, dtype=jnp.int32)[:, None] < limits[None, :],
        0.0, -1e30).astype(jnp.float32)                             # (S, NW*OC)

    w_out_b = w_out.astype(jnp.bfloat16)
    b_out_f = b_out.astype(jnp.float32)

    kernel = functools.partial(bert_cnn_kernel, seq_len=S)
    out = pl.pallas_call(
        kernel,
        out_shape=jax.ShapeDtypeStruct((b_pad, NC), jnp.float32),
        grid_spec=pltpu.PrefetchScalarGridSpec(
            num_scalar_prefetch=0,
            grid=(b_pad // bt,),
            in_specs=[
                pl.BlockSpec((bt, s_pad, CH), lambda b: (b, 0, 0)),       # x
                pl.BlockSpec((W_MAX * CH, NW * OC), lambda b: (0, 0)),    # fused conv W
                pl.BlockSpec((1, NW * OC), lambda b: (0, 0)),             # conv bias
                pl.BlockSpec((S, NW * OC), lambda b: (0, 0)),             # valid mask
                pl.BlockSpec((NW * OC, NC), lambda b: (0, 0)),            # output W
                pl.BlockSpec((1, NC), lambda b: (0, 0)),                  # output b
            ],
            out_specs=pl.BlockSpec((bt, NC), lambda b: (b, 0)),
        ),
        compiler_params=pltpu.CompilerParams(
            dimension_semantics=("parallel",)),      # batch axis shards v7x megacore
    )(x_l, big_w, bias, neg_mask, w_out_b, b_out_f)
    return out[:B]


def synthetic_bert_hidden_states(input_ids, emb_table, layer_projs):
    # TODO(synk): the pretrained BERT encoder has no clean single-kernel Pallas
    # equivalent; it is replaced by a deterministic embedding + per-layer linear
    # map producing the "last 4 hidden states" tensor (B, 4, S, H).
    h0 = emb_table[input_ids]                              # (B, S, H)
    states = [jnp.tanh(h0 @ layer_projs[l]) for l in range(4)]
    return jnp.stack(states, axis=1).astype(jnp.float32)   # (B, 4, S, H)


def reference_forward(x, conv_ws, conv_bs, w_out, b_out):
    """Plain-JAX f32 reference mirroring the PyTorch forward (eval mode)."""
    pooled = []
    for w_arr, b_arr in zip(conv_ws, conv_bs):
        y = jax.lax.conv_general_dilated(
            x, w_arr, window_strides=(1, 1), padding="VALID",
            dimension_numbers=("NCHW", "OIHW", "NCHW"))    # (B, OC, L, 1)
        y = y + b_arr.reshape(1, -1, 1, 1)
        y = jnp.maximum(y, 0.0)[..., 0]                    # squeeze(3), ReLU
        pooled.append(jnp.max(y, axis=2))                  # max_pool1d over time
    flat = jnp.concatenate(pooled, axis=1)
    return flat @ w_out + b_out


if __name__ == "__main__":
    # Small shapes consistent with the module's forward
    B, S, H = 2, 8, 32            # batch, seq_len, hidden ("input_size")
    C_IN, OC = 4, 32              # last-4 BERT layers, conv out_channels
    NUM_CLASSES = 6
    VOCAB = 30

    key = jax.random.PRNGKey(0)
    keys = jax.random.split(key, 16)

    # Deterministic synthetic "BERT" parameters (glue)
    input_ids = jax.random.randint(keys[0], (B, S), 0, VOCAB)
    emb_table = jax.random.normal(keys[1], (VOCAB, H), jnp.float32) * 0.1
    layer_projs = jax.random.normal(keys[2], (4, H, H), jnp.float32) * 0.1

    # Conv2d parameters: weight (OC, C_IN, w, H), bias (1, OC)
    conv_ws, conv_bs = [], []
    for i, w in enumerate(WINDOW_SIZES):
        conv_ws.append(jax.random.normal(keys[3 + i], (OC, C_IN, w, H),
                                         jnp.float32) * 0.05)
        conv_bs.append(jax.random.normal(keys[8 + i], (1, OC),
                                         jnp.float32) * 0.05)

    # Output linear: (len(window_sizes)*OC, num_classes)
    w_out = jax.random.normal(keys[13], (len(WINDOW_SIZES) * OC, NUM_CLASSES),
                              jnp.float32) * 0.05
    b_out = jax.random.normal(keys[14], (1, NUM_CLASSES), jnp.float32) * 0.05

    # "BERT" hidden states (last 4 layers stacked) -> conv input (B, 4, S, H)
    x = synthetic_bert_hidden_states(input_ids, emb_table, layer_projs)

    preds = bert_cnn_forward(x, conv_ws, conv_bs, w_out, b_out)
    preds = jax.block_until_ready(preds)

    ref = reference_forward(x, conv_ws, conv_bs, w_out, b_out)
    assert preds.shape == (B, NUM_CLASSES)
    # MXU operands are bf16 (f32 accumulation), so loosen tolerance vs f32 ref.
    assert jnp.allclose(preds, ref, atol=1e-2, rtol=1e-2), (
        f"mismatch: max abs err {jnp.max(jnp.abs(preds - ref))}")

    print("KERNEL_OK")
</pallas_src>

<mosaic_0001>
module attributes {stable_mosaic.version = 11 : i64} {
  func.func @bert_cnn_kernel(%arg0: i32, %arg1: memref<2x16x128xf32, #tpu.memory_space<vmem>>, %arg2: memref<640x160xbf16, #tpu.memory_space<vmem>>, %arg3: memref<1x160xf32, #tpu.memory_space<vmem>>, %arg4: memref<8x160xf32, #tpu.memory_space<vmem>>, %arg5: memref<160x6xbf16, #tpu.memory_space<vmem>>, %arg6: memref<1x6xf32, #tpu.memory_space<vmem>>, %arg7: memref<2x6xf32, #tpu.memory_space<vmem>>) attributes {dimension_semantics = [#tpu.dimension_semantics<parallel>], iteration_bounds = array<i64: 1>, scalar_prefetch = 0 : i64, scratch_operands = 0 : i64, tpu.core_type = #tpu.core_type<tc>, window_params = [{transform_indices = @transform_0, window_bounds = array<i64: 2, 16, 128>}, {pipeline_mode = #tpu.pipeline_mode<synchronous>, transform_indices = @transform_1, window_bounds = array<i64: 640, 160>}, {pipeline_mode = #tpu.pipeline_mode<synchronous>, transform_indices = @transform_2, window_bounds = array<i64: 1, 160>}, {pipeline_mode = #tpu.pipeline_mode<synchronous>, transform_indices = @transform_3, window_bounds = array<i64: 8, 160>}, {pipeline_mode = #tpu.pipeline_mode<synchronous>, transform_indices = @transform_4, window_bounds = array<i64: 160, 6>}, {pipeline_mode = #tpu.pipeline_mode<synchronous>, transform_indices = @transform_5, window_bounds = array<i64: 1, 6>}, {transform_indices = @transform_6, window_bounds = array<i64: 2, 6>}]} {
    %c0 = arith.constant 0 : index
    %c0_0 = arith.constant 0 : index
    %c0_1 = arith.constant 0 : index
    %0 = vector.load %arg1[%c0, %c0_0, %c0_1] : memref<2x16x128xf32, #tpu.memory_space<vmem>>, vector<2x16x128xf32>
    %1 = vector.extract_strided_slice %0 {offsets = [0, 0, 0], sizes = [2, 8, 128], strides = [1, 1, 1]} : vector<2x16x128xf32> to vector<2x8x128xf32>
    %2 = vector.extract_strided_slice %0 {offsets = [0, 1, 0], sizes = [2, 8, 128], strides = [1, 1, 1]} : vector<2x16x128xf32> to vector<2x8x128xf32>
    %3 = vector.extract_strided_slice %0 {offsets = [0, 2, 0], sizes = [2, 8, 128], strides = [1, 1, 1]} : vector<2x16x128xf32> to vector<2x8x128xf32>
    %4 = vector.extract_strided_slice %0 {offsets = [0, 3, 0], sizes = [2, 8, 128], strides = [1, 1, 1]} : vector<2x16x128xf32> to vector<2x8x128xf32>
    %5 = vector.extract_strided_slice %0 {offsets = [0, 4, 0], sizes = [2, 8, 128], strides = [1, 1, 1]} : vector<2x16x128xf32> to vector<2x8x128xf32>
    %6 = tpu.concatenate %1, %2, %3, %4, %5 in 2 : vector<2x8x128xf32>, vector<2x8x128xf32>, vector<2x8x128xf32>, vector<2x8x128xf32>, vector<2x8x128xf32> -> vector<2x8x640xf32>
    %7 = vector.shape_cast %6 : vector<2x8x640xf32> to vector<16x640xf32>
    %8 = arith.truncf %7 : vector<16x640xf32> to vector<16x640xbf16>
    %c0_2 = arith.constant 0 : index
    %c0_3 = arith.constant 0 : index
    %9 = vector.load %arg2[%c0_2, %c0_3] : memref<640x160xbf16, #tpu.memory_space<vmem>>, vector<640x160xbf16>
    %cst = arith.constant dense<0.000000e+00> : vector<16x160xf32>
    %10 = tpu.matmul %8, %9, %cst {dimension_numbers = #tpu.dot_dimension_numbers<[1], [0], [0], [1], [0, 0, 1, 1], [], []>} : vector<16x640xbf16>, vector<640x160xbf16>, vector<16x160xf32> -> vector<16x160xf32>
    %11 = vector.shape_cast %10 : vector<16x160xf32> to vector<2x8x160xf32>
    %c0_4 = arith.constant 0 : index
    %c0_5 = arith.constant 0 : index
    %12 = vector.load %arg3[%c0_4, %c0_5] : memref<1x160xf32, #tpu.memory_space<vmem>>, vector<1x160xf32>
    %13 = vector.shape_cast %12 : vector<1x160xf32> to vector<1x1x160xf32>
    %14 = vector.broadcast %13 : vector<1x1x160xf32> to vector<2x8x160xf32>
    %15 = arith.addf %11, %14 : vector<2x8x160xf32>
    %cst_6 = arith.constant 0.000000e+00 : f32
    %16 = vector.broadcast %cst_6 : f32 to vector<2x8x160xf32>
    %17 = arith.maximumf %15, %16 : vector<2x8x160xf32>
    %c0_7 = arith.constant 0 : index
    %c0_8 = arith.constant 0 : index
    %18 = vector.load %arg4[%c0_7, %c0_8] : memref<8x160xf32, #tpu.memory_space<vmem>>, vector<8x160xf32>
    %19 = vector.shape_cast %18 : vector<8x160xf32> to vector<1x8x160xf32>
    %20 = vector.broadcast %19 : vector<1x8x160xf32> to vector<2x8x160xf32>
    %21 = arith.addf %17, %20 : vector<2x8x160xf32>
    %cst_9 = arith.constant dense<0xFF800000> : vector<2x160xf32>
    %22 = vector.multi_reduction <maximumf>, %21, %cst_9 [1] : vector<2x8x160xf32> to vector<2x160xf32>
    %23 = arith.truncf %22 : vector<2x160xf32> to vector<2x160xbf16>
    %c0_10 = arith.constant 0 : index
    %c0_11 = arith.constant 0 : index
    %24 = vector.load %arg5[%c0_10, %c0_11] : memref<160x6xbf16, #tpu.memory_space<vmem>>, vector<160x6xbf16>
    %cst_12 = arith.constant dense<0.000000e+00> : vector<2x6xf32>
    %25 = tpu.matmul %23, %24, %cst_12 {dimension_numbers = #tpu.dot_dimension_numbers<[1], [0], [0], [1], [0, 0, 1, 1], [], []>} : vector<2x160xbf16>, vector<160x6xbf16>, vector<2x6xf32> -> vector<2x6xf32>
    %c0_13 = arith.constant 0 : index
    %c0_14 = arith.constant 0 : index
    %26 = vector.load %arg6[%c0_13, %c0_14] : memref<1x6xf32, #tpu.memory_space<vmem>>, vector<1x6xf32>
    %27 = vector.broadcast %26 : vector<1x6xf32> to vector<2x6xf32>
    %28 = arith.addf %25, %27 : vector<2x6xf32>
    %c0_15 = arith.constant 0 : index
    %c0_16 = arith.constant 0 : index
    %29 = vector.load %arg7[%c0_15, %c0_16] : memref<2x6xf32, #tpu.memory_space<vmem>>, vector<2x6xf32>
    tpu.vector_store %arg7[%c0_15, %c0_16], %28 {strides = array<i32>} : memref<2x6xf32, #tpu.memory_space<vmem>>, vector<2x6xf32>,
    return
  }
  func.func @transform_0(%arg0: i32) -> (i32, i32, i32) {
    %c0_i32 = arith.constant 0 : i32
    %c0_i32_0 = arith.constant 0 : i32
    %c0_i32_1 = arith.constant 0 : i32
    return %arg0, %c0_i32, %c0_i32_0 : i32, i32, i32
  }
  func.func @transform_1(%arg0: i32) -> (i32, i32) {
    %c0_i32 = arith.constant 0 : i32
    %c0_i32_0 = arith.constant 0 : i32
    %c0_i32_1 = arith.constant 0 : i32
    return %c0_i32, %c0_i32_0 : i32, i32
  }
  func.func @transform_2(%arg0: i32) -> (i32, i32) {
    %c0_i32 = arith.constant 0 : i32
    %c0_i32_0 = arith.constant 0 : i32
    %c0_i32_1 = arith.constant 0 : i32
    return %c0_i32, %c0_i32_0 : i32, i32
  }
  func.func @transform_3(%arg0: i32) -> (i32, i32) {
    %c0_i32 = arith.constant 0 : i32
    %c0_i32_0 = arith.constant 0 : i32
    %c0_i32_1 = arith.constant 0 : i32
    return %c0_i32, %c0_i32_0 : i32, i32
  }
  func.func @transform_4(%arg0: i32) -> (i32, i32) {
    %c0_i32 = arith.constant 0 : i32
    %c0_i32_0 = arith.constant 0 : i32
    %c0_i32_1 = arith.constant 0 : i32
    return %c0_i32, %c0_i32_0 : i32, i32
  }
  func.func @transform_5(%arg0: i32) -> (i32, i32) {
    %c0_i32 = arith.constant 0 : i32
    %c0_i32_0 = arith.constant 0 : i32
    %c0_i32_1 = arith.constant 0 : i32
    return %c0_i32, %c0_i32_0 : i32, i32
  }
  func.func @transform_6(%arg0: i32) -> (i32, i32) {
    %c0_i32 = arith.constant 0 : i32
    %c0_i32_0 = arith.constant 0 : i32
    return %arg0, %c0_i32 : i32, i32
  }
}

</mosaic_0001>

<bundles_post_ra>
// kernel: tpu_custom_call.1
= control target key start
LH: loop header
LB: loop body
LE: loop exit
PB: predicated region body
PF: predicated region fallthrough
CT: control target
= control target key end

     0   :  { %vm42_vm0 = vcmask 1045504   ;;  %vm51_vm1 = vcmask 1044480   ;;  %vm33_vm2 = vcmask 1046528   ;;  %vm60_vm3 = vcmask 1043456   ;;  %s2012_s0 = inlined_call_operand.vmem [shape: f32[2,16,128], index: 0, kind: input, shape index: {}]   ;;  %s2013_s1 = inlined_call_operand.vmem [shape: bf16[640,160], index: 1, kind: input, shape index: {}]   ;;  %s2014_s2 = inlined_call_operand.vmem [shape: f32[1,160], index: 2, kind: input, shape index: {}]   ;;  %s2015_s3 = inlined_call_operand.vmem [shape: f32[8,160], index: 3, kind: input, shape index: {}]   ;;  %s2016_s4 = inlined_call_operand.vmem [shape: bf16[160,6], index: 4, kind: input, shape index: {}]   ;;  %s2017_s5 = inlined_call_operand.vmem [shape: f32[1,6], index: 5, kind: input, shape index: {}]   ;;  %s2018_s6 = inlined_call_operand.hbm [shape: f32[2,6], index: 6, kind: output, shape index: {}]  }
   0x1   :  { %v948_v0 = vld [vmem:[%s2013_s1 + $0x70] sm:$0xf]  ;;  %v1266_v1 = vld [vmem:[%s2013_s1 + $0x74] sm:$0xf0]  ;;  %v940_v11 = vld [vmem:[%s2013_s1 + $0x60] sm:$0xf] }
   0x2   :  { %v1012_v2 = vld [vmem:[%s2013_s1 + $0xf0] sm:$0xf]  ;;  %v949_v3 = vor.u32 %v1266_v1, %v948_v0  ;;  %v1282_v4 = vld [vmem:[%s2013_s1 + $0xf4] sm:$0xf0]  ;;  %v1264_v13 = vld [vmem:[%s2013_s1 + $0x64] sm:$0xf0] }
   0x3   :  { %v1076_v5 = vld [vmem:[%s2013_s1 + $0x170] sm:$0xf]  ;;  %v1298_v6 = vld [vmem:[%s2013_s1 + $0x174] sm:$0xf0]  ;;  %v1013_v7 = vor.u32 %v1282_v4, %v1012_v2  ;;  %v1004_v14 = vld [vmem:[%s2013_s1 + $0xe0] sm:$0xf]  ;;  %v941_v16 = vor.u32 %v1264_v13, %v940_v11 }
   0x4   :  { %v1077_v8 = vor.u32 %v1298_v6, %v1076_v5  ;;  %v1140_v9 = vld [vmem:[%s2013_s1 + $0x1f0] sm:$0xf]  ;;  %v1314_v10 = vld [vmem:[%s2013_s1 + $0x1f4] sm:$0xf0]  ;;  %554 = vmatpush.bf16.msra.mxu0 %v949_v3  ;;  %v1280_v15 = vld [vmem:[%s2013_s1 + $0xe4] sm:$0xf0] }
   0x5   :  { %v1141_v12 = vor.u32 %v1314_v10, %v1140_v9  ;;  %568 = vmatpush.bf16.msra.mxu1 %v1013_v7  ;;  %v1005_v17 = vor.u32 %v1280_v15, %v1004_v14  ;;  %v1068_v18 = vld [vmem:[%s2013_s1 + $0x160] sm:$0xf]  ;;  %v1296_v19 = vld [vmem:[%s2013_s1 + $0x164] sm:$0xf0]  ;;  %v932_v23 = vld [vmem:[%s2013_s1 + $0x50] sm:$0xf] }
   0x6   :  { %582 = vmatpush.bf16.msra.mxu2 %v1077_v8  ;;  %v1132_v20 = vld [vmem:[%s2013_s1 + $0x1e0] sm:$0xf]  ;;  %v1069_v21 = vor.u32 %v1296_v19, %v1068_v18  ;;  %v1312_v22 = vld [vmem:[%s2013_s1 + $0x1e4] sm:$0xf0]  ;;  %v1262_v24 = vld [vmem:[%s2013_s1 + $0x54] sm:$0xf0] }
   0x7   :  { %596 = vmatpush.bf16.msra.mxu3 %v1141_v12  ;;  %v1133_v25 = vor.u32 %v1312_v22, %v1132_v20  ;;  %v996_v26 = vld [vmem:[%s2013_s1 + $0xd0] sm:$0xf]  ;;  %v1278_v27 = vld [vmem:[%s2013_s1 + $0xd4] sm:$0xf0]  ;;  %v933_v29 = vor.u32 %v1262_v24, %v932_v23  ;;  %v924_v35 = vld [vmem:[%s2013_s1 + $0x40] sm:$0xf] }
   0x8   :  { %v1060_v28 = vld [vmem:[%s2013_s1 + $0x150] sm:$0xf]  ;;  %555 = vmatpush.bf16.msra.mxu0 %v941_v16  ;;  %v1294_v30 = vld [vmem:[%s2013_s1 + $0x154] sm:$0xf0]  ;;  %v997_v33 = vor.u32 %v1278_v27, %v996_v26  ;;  %v1260_v36 = vld [vmem:[%s2013_s1 + $0x44] sm:$0xf0] }
   0x9   :  { %v1124_v31 = vld [vmem:[%s2013_s1 + $0x1d0] sm:$0xf]  ;;  %v1310_v32 = vld [vmem:[%s2013_s1 + $0x1d4] sm:$0xf0]  ;;  %569 = vmatpush.bf16.msra.mxu1 %v1005_v17  ;;  %v1061_v34 = vor.u32 %v1294_v30, %v1060_v28  ;;  %v988_v37 = vld [vmem:[%s2013_s1 + $0xc0] sm:$0xf]  ;;  %v925_v44 = vor.u32 %v1260_v36, %v924_v35 }
   0xa   :  { %583 = vmatpush.bf16.msra.mxu2 %v1069_v21  ;;  %v1125_v38 = vor.u32 %v1310_v32, %v1124_v31  ;;  %v1276_v39 = vld [vmem:[%s2013_s1 + $0xc4] sm:$0xf0]  ;;  %v1052_v40 = vld [vmem:[%s2013_s1 + $0x140] sm:$0xf]  ;;  %v916_v47 = vld [vmem:[%s2013_s1 + $0x30] sm:$0xf] }
   0xb   :  { %597 = vmatpush.bf16.msra.mxu3 %v1133_v25  ;;  %v1292_v41 = vld [vmem:[%s2013_s1 + $0x144] sm:$0xf0]  ;;  %v1116_v42 = vld [vmem:[%s2013_s1 + $0x1c0] sm:$0xf]  ;;  %v989_v45 = vor.u32 %v1276_v39, %v988_v37  ;;  %v1258_v48 = vld [vmem:[%s2013_s1 + $0x34] sm:$0xf0] }
   0xc   :  { %v1308_v43 = vld [vmem:[%s2013_s1 + $0x1c4] sm:$0xf0]  ;;  %556 = vmatpush.bf16.msra.mxu0 %v933_v29  ;;  %v1053_v46 = vor.u32 %v1292_v41, %v1052_v40  ;;  %v980_v49 = vld [vmem:[%s2013_s1 + $0xb0] sm:$0xf]  ;;  %v1274_v51 = vld [vmem:[%s2013_s1 + $0xb4] sm:$0xf0]  ;;  %v917_v56 = vor.u32 %v1258_v48, %v916_v47 }
   0xd   :  { %570 = vmatpush.bf16.msra.mxu1 %v997_v33  ;;  %v1117_v50 = vor.u32 %v1308_v43, %v1116_v42  ;;  %v1044_v52 = vld [vmem:[%s2013_s1 + $0x130] sm:$0xf]  ;;  %v1290_v53 = vld [vmem:[%s2013_s1 + $0x134] sm:$0xf0]  ;;  %v981_v57 = vor.u32 %v1274_v51, %v980_v49  ;;  %v908_v59 = vld [vmem:[%s2013_s1 + $0x20] sm:$0xf] }
   0xe   :  { %584 = vmatpush.bf16.msra.mxu2 %v1061_v34  ;;  %v1108_v54 = vld [vmem:[%s2013_s1 + $0x1b0] sm:$0xf]  ;;  %v1306_v55 = vld [vmem:[%s2013_s1 + $0x1b4] sm:$0xf0]  ;;  %v1045_v58 = vor.u32 %v1290_v53, %v1044_v52  ;;  %v1256_v60 = vld [vmem:[%s2013_s1 + $0x24] sm:$0xf0] }
   0xf   :  { %598 = vmatpush.bf16.msra.mxu3 %v1125_v38  ;;  %v972_v61 = vld [vmem:[%s2013_s1 + $0xa0] sm:$0xf]  ;;  %v1109_v62 = vor.u32 %v1306_v55, %v1108_v54  ;;  %v1272_v63 = vld [vmem:[%s2013_s1 + $0xa4] sm:$0xf0]  ;;  %v909_v4 = vor.u32 %v1256_v60, %v908_v59  ;;  %v900_v7 = vld [vmem:[%s2013_s1 + $0x10] sm:$0xf] }
  0x10   :  { %557 = vmatpush.bf16.msra.mxu0 %v925_v44  ;;  %v1036_v0 = vld [vmem:[%s2013_s1 + $0x120] sm:$0xf]  ;;  %v1288_v1 = vld [vmem:[%s2013_s1 + $0x124] sm:$0xf0]  ;;  %v973_v5 = vor.u32 %v1272_v63, %v972_v61  ;;  %v1254_v8 = vld [vmem:[%s2013_s1 + $0x14] sm:$0xf0] }
  0x11   :  { %571 = vmatpush.bf16.msra.mxu1 %v989_v45  ;;  %v1100_v2 = vld [vmem:[%s2013_s1 + $0x1a0] sm:$0xf]  ;;  %v1304_v3 = vld [vmem:[%s2013_s1 + $0x1a4] sm:$0xf0]  ;;  %v1037_v6 = vor.u32 %v1288_v1, %v1036_v0  ;;  %v964_v9 = vld [vmem:[%s2013_s1 + $0x90] sm:$0xf]  ;;  %v901_v16 = vor.u32 %v1254_v8, %v900_v7 }
  0x12   :  { %585 = vmatpush.bf16.msra.mxu2 %v1053_v46  ;;  %v1101_v10 = vor.u32 %v1304_v3, %v1100_v2  ;;  %v1270_v11 = vld [vmem:[%s2013_s1 + $0x94] sm:$0xf0]  ;;  %v1028_v12 = vld [vmem:[%s2013_s1 + $0x110] sm:$0xf]  ;;  %v892_v17 = vld [vmem:[%s2013_s1] sm:$0xf] }
  0x13   :  { %599 = vmatpush.bf16.msra.mxu3 %v1117_v50  ;;  %v1286_v13 = vld [vmem:[%s2013_s1 + $0x114] sm:$0xf0]  ;;  %v1092_v14 = vld [vmem:[%s2013_s1 + $0x190] sm:$0xf]  ;;  %v1252_v18 = vld [vmem:[%s2013_s1 + $0x4] sm:$0xf0]  ;;  %v965_v20 = vor.u32 %v1270_v11, %v964_v9 }
  0x14   :  { %558 = vmatpush.bf16.msra.mxu0 %v917_v56  ;;  %v1302_v15 = vld [vmem:[%s2013_s1 + $0x194] sm:$0xf0]  ;;  %v956_v19 = vld [vmem:[%s2013_s1 + $0x80] sm:$0xf]  ;;  %v1029_v21 = vor.u32 %v1286_v13, %v1028_v12  ;;  %v1268_v22 = vld [vmem:[%s2013_s1 + $0x84] sm:$0xf0]  ;;  %v893_v32 = vor.u32 %v1252_v18, %v892_v17 }
  0x15   :  { %572 = vmatpush.bf16.msra.mxu1 %v981_v57  ;;  %v1020_v23 = vld [vmem:[%s2013_s1 + $0x100] sm:$0xf]  ;;  %v1284_v24 = vld [vmem:[%s2013_s1 + $0x104] sm:$0xf0]  ;;  %v1093_v25 = vor.u32 %v1302_v15, %v1092_v14  ;;  %v1204_v26 = vld [vmem:[%s2013_s1 + $0x270] sm:$0xf]  ;;  %v957_v36 = vor.u32 %v1268_v22, %v956_v19 }
  0x16   :  { %586 = vmatpush.bf16.msra.mxu2 %v1045_v58  ;;  %v1330_v27 = vld [vmem:[%s2013_s1 + $0x274] sm:$0xf0]  ;;  %v1265_v28 = vld [vmem:[%s2013_s1 + $0x74] sm:$0xf]  ;;  %v950_v29 = vld [vmem:[%s2013_s1 + $0x78] sm:$0xf0]  ;;  %v1021_v37 = vor.u32 %v1284_v24, %v1020_v23 }
  0x17   :  { %600 = vmatpush.bf16.msra.mxu3 %v1109_v62  ;;  %v1281_v30 = vld [vmem:[%s2013_s1 + $0xf4] sm:$0xf]  ;;  %v1014_v31 = vld [vmem:[%s2013_s1 + $0xf8] sm:$0xf0]  ;;  %v1084_v33 = vld [vmem:[%s2013_s1 + $0x180] sm:$0xf]  ;;  %v1205_v41 = vor.u32 %v1330_v27, %v1204_v26  ;;  %v953_v42 = vor.u32 %v1265_v28, %v950_v29 }
  0x18   :  { %559 = vmatpush.bf16.msra.mxu0 %v909_v4  ;;  %v1300_v34 = vld [vmem:[%s2013_s1 + $0x184] sm:$0xf0]  ;;  %v1297_v35 = vld [vmem:[%s2013_s1 + $0x174] sm:$0xf]  ;;  %v1078_v38 = vld [vmem:[%s2013_s1 + $0x178] sm:$0xf0]  ;;  %v1017_v46 = vor.u32 %v1281_v30, %v1014_v31 }
  0x19   :  { %573 = vmatpush.bf16.msra.mxu1 %v973_v5  ;;  %v1196_v39 = vld [vmem:[%s2013_s1 + $0x260] sm:$0xf]  ;;  %v1328_v40 = vld [vmem:[%s2013_s1 + $0x264] sm:$0xf0]  ;;  %v1263_v43 = vld [vmem:[%s2013_s1 + $0x64] sm:$0xf]  ;;  %v1085_v47 = vor.u32 %v1300_v34, %v1084_v33  ;;  %v1081_v51 = vor.u32 %v1297_v35, %v1078_v38 }
  0x1a   :  { %587 = vmatpush.bf16.msra.mxu2 %v1037_v6  ;;  %v942_v44 = vld [vmem:[%s2013_s1 + $0x68] sm:$0xf0]  ;;  %v1279_v45 = vld [vmem:[%s2013_s1 + $0xe4] sm:$0xf]  ;;  %v1648_v52 = vld [vmem:[%s2013_s1 + $0x250] sm:$0xf]  ;;  %v1197_v58 = vor.u32 %v1328_v40, %v1196_v39 }
  0x1b   :  { %601 = vmatpush.bf16.msra.mxu3 %v1101_v10  ;;  %v1006_v48 = vld [vmem:[%s2013_s1 + $0xe8] sm:$0xf0]  ;;  %v1295_v49 = vld [vmem:[%s2013_s1 + $0x164] sm:$0xf]  ;;  %v1653_v53 = vld [vmem:[%s2013_s1 + $0x254] sm:$0xf0]  ;;  %v945_v63 = vor.u32 %v1263_v43, %v942_v44 }
  0x1c   :  { %560 = vmatpush.bf16.msra.mxu0 %v901_v16  ;;  %v1070_v50 = vld [vmem:[%s2013_s1 + $0x168] sm:$0xf0]  ;;  %v1658_v54 = vld [vmem:[%s2013_s1 + $0x54] sm:$0xf]  ;;  %v934_v55 = vld [vmem:[%s2013_s1 + $0x58] sm:$0xf0]  ;;  %v1009_v5 = vor.u32 %v1279_v45, %v1006_v48  ;;  %v1189_v10 = vor.u32 %v1653_v53, %v1648_v52 }
  0x1d   :  { %574 = vmatpush.bf16.msra.mxu1 %v965_v20  ;;  %v1666_v56 = vld [vmem:[%s2012_s0] sm:$0xff]  ;;  %v1671_v57 = vld [vmem:[%s2012_s0 + $0x10] sm:$0xff]  ;;  %v1683_v61 = vld [vmem:[%s2012_s0 + $0x8] sm:$0xff]  ;;  %v1073_v8 = vor.u32 %v1295_v49, %v1070_v50  ;;  %v937_v11 = vor.u32 %v1658_v54, %v934_v55 }
  0x1e   :  { %588 = vmatpush.bf16.msra.mxu2 %v1029_v21  ;;  %v1277_v59 = vld [vmem:[%s2013_s1 + $0xd4] sm:$0xf]  ;;  %v1678_v60 = vpack.c.bf16 %v1671_v57, %v1666_v56  ;;  %v43_v62 = vrot.slane %v1666_v56, 2  ;;  %v998_v0 = vld [vmem:[%s2013_s1 + $0xd8] sm:$0xf0]  ;;  %v44_v2 = vrot.slane %v1683_v61, 2 }
  0x1f   :  { %602 = vmatpush.bf16.msra.mxu3 %v1093_v25  ;;  %v1692_v1 = vld [vmem:[%s2012_s0 + $0x18] sm:$0xff]  ;;  %v46_v3 = vrot.slane %v1671_v57, 2  ;;  %v52_v4 = vrot.slane %v1666_v56, 3  ;;  %v53_v7 = vrot.slane %v1683_v61, 3  ;;  %v1001_v12 = vor.u32 %v1277_v59, %v998_v0  ;;  %v1293_v13 = vld [vmem:[%s2013_s1 + $0x154] sm:$0xf] }
  0x20   :  { %561 = vmatpush.bf16.msra.mxu0 %v893_v32  ;;  %v47_v6 = vrot.slane %v1692_v1, 2  ;;  %v45_v9 = vsel %vm42_vm0, %v43_v62, %v44_v2  ;;  %v1062_v14 = vld [vmem:[%s2013_s1 + $0x158] sm:$0xf0]  ;;  %v1180_v15 = vld [vmem:[%s2013_s1 + $0x240] sm:$0xf]  ;;  %v55_v21 = vrot.slane %v1671_v57, 3 }
  0x21   :  { %575 = vmatpush.bf16.msra.mxu1 %v957_v36  ;;  %v1324_v17 = vld [vmem:[%s2013_s1 + $0x244] sm:$0xf0]  ;;  %v1259_v18 = vld [vmem:[%s2013_s1 + $0x44] sm:$0xf]  ;;  %v54_v20 = vsel %vm51_vm1, %v52_v4, %v53_v7  ;;  %v56_v22 = vrot.slane %v1692_v1, 3  ;;  %v34_v24 = vrot.slane %v1666_v56, 1  ;;  %v1065_v27 = vor.u32 %v1293_v13, %v1062_v14 }
  0x22   :  { %589 = vmatpush.bf16.msra.mxu2 %v1021_v37  ;;  %v48_v16 = vsel %vm42_vm0, %v46_v3, %v47_v6  ;;  %v926_v23 = vld [vmem:[%s2013_s1 + $0x48] sm:$0xf0]  ;;  %v35_v25 = vrot.slane %v1683_v61, 1  ;;  %v37_v26 = vrot.slane %v1671_v57, 1  ;;  %v1275_v28 = vld [vmem:[%s2013_s1 + $0xc4] sm:$0xf]  ;;  %v1181_v36 = vor.u32 %v1324_v17, %v1180_v15 }
  0x23   :  { %603 = vmatpush.bf16.msra.mxu3 %v1085_v47  ;;  %562 = vmatmul.bf16.vlgmr.msra.gmra.mxu0 %v1678_v60  ;;  %v1720_v19 = vpack.c.bf16 %v48_v16, %v45_v9  ;;  %v990_v29 = vld [vmem:[%s2013_s1 + $0xc8] sm:$0xf0]  ;;  %v57_v30 = vsel %vm51_vm1, %v55_v21, %v56_v22  ;;  %v38_v31 = vrot.slane %v1692_v1, 1  ;;  %v1291_v32 = vld [vmem:[%s2013_s1 + $0x144] sm:$0xf]  ;;  %v929_v37 = vor.u32 %v1259_v18, %v926_v23 }
  0x24   :  { %610 = vmatpush.bf16.msrb.mxu0 %v1205_v41  ;;  %v1054_v33 = vld [vmem:[%s2013_s1 + $0x148] sm:$0xf0]  ;;  %v1746_v34 = vpack.c.bf16 %v57_v30, %v54_v20  ;;  %v36_v35 = vsel %vm33_vm2, %v34_v24, %v35_v25  ;;  %v1172_v38 = vld [vmem:[%s2013_s1 + $0x230] sm:$0xf]  ;;  %v993_v40 = vor.u32 %v1275_v28, %v990_v29  ;;  %v1322_v41 = vld [vmem:[%s2013_s1 + $0x234] sm:$0xf0] }
  0x25   :  { %624 = vmatpush.bf16.msrb.mxu1 %v953_v42  ;;  %590 = vmatmul.bf16.vlgmr.msra.gmra.mxu2 %v1720_v19  ;;  %v39_v39 = vsel %vm33_vm2, %v37_v26, %v38_v31  ;;  %v1257_v42 = vld [vmem:[%s2013_s1 + $0x34] sm:$0xf]  ;;  %v918_v43 = vld [vmem:[%s2013_s1 + $0x38] sm:$0xf0]  ;;  %v1057_v45 = vor.u32 %v1291_v32, %v1054_v33  ;;  %v1173_v50 = vor.u32 %v1322_v41, %v1172_v38  ;;  %v1164_v52 = vld [vmem:[%s2013_s1 + $0x220] sm:$0xf] }
  0x26   :  { %638 = vmatpush.bf16.msrb.mxu2 %v1017_v46  ;;  %604 = vmatmul.bf16.vlgmr.msra.gmra.mxu3 %v1746_v34  ;;  %v1763_v44 = vpack.c.bf16 %v39_v39, %v36_v35  ;;  %v1273_v46 = vld [vmem:[%s2013_s1 + $0xb4] sm:$0xf]  ;;  %v982_v47 = vld [vmem:[%s2013_s1 + $0xb8] sm:$0xf0]  ;;  %v1320_v54 = vld [vmem:[%s2013_s1 + $0x224] sm:$0xf0] }
  0x27   :  { %652 = vmatpush.bf16.msrb.mxu3 %v1081_v51  ;;  %v1289_v48 = vld [vmem:[%s2013_s1 + $0x134] sm:$0xf]  ;;  %v1046_v49 = vld [vmem:[%s2013_s1 + $0x138] sm:$0xf0]  ;;  %v921_v51 = vor.u32 %v1257_v42, %v918_v43  ;;  %v985_v53 = vor.u32 %v1273_v46, %v982_v47  ;;  %v1255_v55 = vld [vmem:[%s2013_s1 + $0x24] sm:$0xf]  ;;  %v1165_v4 = vor.u32 %v1320_v54, %v1164_v52 }
  0x28   :  { %611 = vmatpush.bf16.msrb.mxu0 %v1197_v58  ;;  %576 = vmatmul.bf16.vlgmr.msra.gmra.mxu1 %v1763_v44  ;;  %v910_v58 = vld [vmem:[%s2013_s1 + $0x28] sm:$0xf0]  ;;  %v1049_v59 = vor.u32 %v1289_v48, %v1046_v49  ;;  %v1271_v62 = vld [vmem:[%s2013_s1 + $0xa4] sm:$0xf]  ;;  %v1156_v3 = vld [vmem:[%s2013_s1 + $0x210] sm:$0xf] }
  0x29   :  { %625 = vmatpush.bf16.msrb.mxu1 %v945_v63  ;;  %v974_v63 = vld [vmem:[%s2013_s1 + $0xa8] sm:$0xf0]  ;;  %v1287_v0 = vld [vmem:[%s2013_s1 + $0x124] sm:$0xf]  ;;  %v1318_v6 = vld [vmem:[%s2013_s1 + $0x214] sm:$0xf0] }
  0x2a   :  { %639 = vmatpush.bf16.msrb.mxu2 %v1009_v5  ;;  %v1038_v2 = vld [vmem:[%s2013_s1 + $0x128] sm:$0xf0]  ;;  %v913_v5 = vor.u32 %v1255_v55, %v910_v58  ;;  %v1253_v7 = vld [vmem:[%s2013_s1 + $0x14] sm:$0xf]  ;;  %v977_v9 = vor.u32 %v1271_v62, %v974_v63  ;;  %v1030_v14 = vld [vmem:[%s2013_s1 + $0x118] sm:$0xf0]  ;;  %v1157_v15 = vor.u32 %v1318_v6, %v1156_v3 }
  0x2b   :  { %653 = vmatpush.bf16.msrb.mxu3 %v1073_v8  ;;  %v902_v8 = vld [vmem:[%s2013_s1 + $0x18] sm:$0xf0]  ;;  %v1285_v13 = vld [vmem:[%s2013_s1 + $0x114] sm:$0xf]  ;;  %v1148_v17 = vld [vmem:[%s2013_s1 + $0x200] sm:$0xf] }
  0x2c   :  { %612 = vmatpush.bf16.msrb.mxu0 %v1189_v10  ;;  %v1269_v10 = vld [vmem:[%s2013_s1 + $0x94] sm:$0xf]  ;;  %v905_v16 = vor.u32 %v1253_v7, %v902_v8  ;;  %v1316_v18 = vld [vmem:[%s2013_s1 + $0x204] sm:$0xf0]  ;;  %v1251_v20 = vld [vmem:[%s2013_s1 + $0x4] sm:$0xf]  ;;  %v1033_v29 = vor.u32 %v1285_v13, %v1030_v14 }
  0x2d   :  { %626 = vmatpush.bf16.msrb.mxu1 %v937_v11  ;;  %v1041_v11 = vor.u32 %v1287_v0, %v1038_v2  ;;  %v894_v21 = vld [vmem:[%s2013_s1 + $0x8] sm:$0xf0]  ;;  %v61_v22 = vrot.slane %v1666_v56, 4  ;;  %v62_v23 = vrot.slane %v1683_v61, 4  ;;  %v64_v24 = vrot.slane %v1671_v57, 4 }
  0x2e   :  { %640 = vmatpush.bf16.msrb.mxu2 %v1001_v12  ;;  %v966_v12 = vld [vmem:[%s2013_s1 + $0x98] sm:$0xf0]  ;;  %v65_v25 = vrot.slane %v1692_v1, 4  ;;  %v958_v28 = vld [vmem:[%s2013_s1 + $0x88] sm:$0xf0]  ;;  %v1149_v1 = vor.u32 %v1316_v18, %v1148_v17  ;;  %v897_v33 = vor.u32 %v1251_v20, %v894_v21 }
  0x2f   :  { %654 = vmatpush.bf16.msrb.mxu3 %v1065_v27  ;;  %v969_v26 = vor.u32 %v1269_v10, %v966_v12  ;;  %v1267_v27 = vld [vmem:[%s2013_s1 + $0x84] sm:$0xf]  ;;  %v1313_v56 = vld [vmem:[%s2013_s1 + $0x1f4] sm:$0xf]  ;;  %v1142_v57 = vld [vmem:[%s2013_s1 + $0x1f8] sm:$0xf0]  ;;  %v63_v35 = vsel %vm60_vm3, %v61_v22, %v62_v23 }
  0x30   :  { %613 = vmatpush.bf16.msrb.mxu0 %v1181_v36  ;;  %v1329_v61 = vld [vmem:[%s2013_s1 + $0x274] sm:$0xf]  ;;  %v1206_v30 = vld [vmem:[%s2013_s1 + $0x278] sm:$0xf0]  ;;  %v1283_v31 = vld [vmem:[%s2013_s1 + $0x104] sm:$0xf]  ;;  %v66_v36 = vsel %vm60_vm3, %v64_v24, %v65_v25  ;;  %v1145_v38 = vor.u32 %v1313_v56, %v1142_v57 }
  0x31   :  { %627 = vmatpush.bf16.msrb.mxu1 %v929_v37  ;;  %v1022_v32 = vld [vmem:[%s2013_s1 + $0x108] sm:$0xf0]  ;;  %v961_v37 = vor.u32 %v1267_v27, %v958_v28 }
  0x32   :  { %641 = vmatpush.bf16.msrb.mxu2 %v993_v40 }
  0x33   :  { %655 = vmatpush.bf16.msrb.mxu3 %v1057_v45 }
  0x34   :  { %614 = vmatpush.bf16.msrb.mxu0 %v1173_v50 }
  0x35   :  { %628 = vmatpush.bf16.msrb.mxu1 %v921_v51 }
  0x36   :  { %642 = vmatpush.bf16.msrb.mxu2 %v985_v53 }
  0x37   :  { %656 = vmatpush.bf16.msrb.mxu3 %v1049_v59 }
  0x38   :  { %615 = vmatpush.bf16.msrb.mxu0 %v1165_v4 }
  0x39   :  { %629 = vmatpush.bf16.msrb.mxu1 %v913_v5 }
  0x3a   :  { %643 = vmatpush.bf16.msrb.mxu2 %v977_v9 }
  0x3b   :  { %657 = vmatpush.bf16.msrb.mxu3 %v1041_v11 }
  0x3c   :  { %616 = vmatpush.bf16.msrb.mxu0 %v1157_v15 }
  0x3d   :  { %630 = vmatpush.bf16.msrb.mxu1 %v905_v16 }
  0x3e   :  { %644 = vmatpush.bf16.msrb.mxu2 %v969_v26 }
  0x3f   :  { %11 = vsyncpa [#allocation3], 0  ;;  %658 = vmatpush.bf16.msrb.mxu3 %v1033_v29  ;;  %v1209_v39 = vor.u32 %v1329_v61, %v1206_v30  ;;  %v1025_v40 = vor.u32 %v1283_v31, %v1022_v32  ;;  %v1311_v41 = vld [vmem:[%s2013_s1 + $0x1e4] sm:$0xf]  ;;  %v1134_v42 = vld [vmem:[%s2013_s1 + $0x1e8] sm:$0xf0]  ;;  %v1872_v43 = vpack.c.bf16 %v66_v36, %v63_v35 }
  0x40   :  { %v1327_v45 = vld [vmem:[%s2013_s1 + $0x264] sm:$0xf]  ;;  %v1198_v46 = vld [vmem:[%s2013_s1 + $0x268] sm:$0xf0]  ;;  %617 = vmatpush.bf16.msrb.mxu0 %v1149_v1  ;;  %v1137_v47 = vor.u32 %v1311_v41, %v1134_v42  ;;  %v1309_v49 = vld [vmem:[%s2013_s1 + $0x1d4] sm:$0xf] }
  0x41   :  { %631 = vmatpush.bf16.msrb.mxu1 %v897_v33  ;;  %v1201_v48 = vor.u32 %v1327_v45, %v1198_v46  ;;  %v1126_v50 = vld [vmem:[%s2013_s1 + $0x1d8] sm:$0xf0]  ;;  %v1325_v51 = vld [vmem:[%s2013_s1 + $0x254] sm:$0xf]  ;;  %v1307_v55 = vld [vmem:[%s2013_s1 + $0x1c4] sm:$0xf] }
  0x42   :  { %645 = vmatpush.bf16.msrb.mxu2 %v961_v37  ;;  %v1190_v52 = vld [vmem:[%s2013_s1 + $0x258] sm:$0xf0]  ;;  %v1129_v53 = vor.u32 %v1309_v49, %v1126_v50  ;;  %v1118_v58 = vld [vmem:[%s2013_s1 + $0x1c8] sm:$0xf0]  ;;  %v1305_v62 = vld [vmem:[%s2013_s1 + $0x1b4] sm:$0xf] }
  0x43   :  { %659 = vmatpush.bf16.msrb.mxu3 %v1025_v40  ;;  %618 = vmatmul.bf16.vlgmr.msrb.gmra.mxu0 %v1872_v43  ;;  %v1193_v54 = vor.u32 %v1325_v51, %v1190_v52  ;;  %v1110_v63 = vld [vmem:[%s2013_s1 + $0x1b8] sm:$0xf0]  ;;  %v1321_v0 = vld [vmem:[%s2013_s1 + $0x234] sm:$0xf]  ;;  %v1303_v5 = vld [vmem:[%s2013_s1 + $0x1a4] sm:$0xf] }
  0x44   :  { %666 = vmatpush.bf16.msra.mxu0 %v1145_v38  ;;  %632 = vmatmul.bf16.vlgmr.msrb.gmra.mxu1 %v1678_v60  ;;  %v1323_v60 = vld [vmem:[%s2013_s1 + $0x244] sm:$0xf]  ;;  %v1174_v2 = vld [vmem:[%s2013_s1 + $0x238] sm:$0xf0]  ;;  %v1113_v3 = vor.u32 %v1305_v62, %v1110_v63  ;;  %v1102_v6 = vld [vmem:[%s2013_s1 + $0x1a8] sm:$0xf0] }
  0x45   :  { %680 = vmatpush.bf16.msra.mxu1 %v1209_v39  ;;  %646 = vmatmul.bf16.vlgmr.msrb.gmra.mxu2 %v1763_v44  ;;  %v1182_v44 = vld [vmem:[%s2013_s1 + $0x248] sm:$0xf0]  ;;  %v1177_v4 = vor.u32 %v1321_v0, %v1174_v2  ;;  %v1319_v7 = vld [vmem:[%s2013_s1 + $0x224] sm:$0xf]  ;;  %v1105_v9 = vor.u32 %v1303_v5, %v1102_v6  ;;  %v1301_v11 = vld [vmem:[%s2013_s1 + $0x194] sm:$0xf] }
  0x46   :  { %660 = vmatmul.bf16.vlgmr.msrb.gmra.mxu3 %v1720_v19  ;;  %v1121_v19 = vor.u32 %v1307_v55, %v1118_v58  ;;  %v1185_v59 = vor.u32 %v1323_v60, %v1182_v44  ;;  %v1166_v8 = vld [vmem:[%s2013_s1 + $0x228] sm:$0xf0]  ;;  %v1094_v12 = vld [vmem:[%s2013_s1 + $0x198] sm:$0xf0]  ;;  %v1317_v13 = vld [vmem:[%s2013_s1 + $0x214] sm:$0xf] }
  0x47   :  { %v1169_v10 = vor.u32 %v1319_v7, %v1166_v8  ;;  %v1158_v14 = vld [vmem:[%s2013_s1 + $0x218] sm:$0xf0]  ;;  %v1097_v15 = vor.u32 %v1301_v11, %v1094_v12  ;;  %v1299_v17 = vld [vmem:[%s2013_s1 + $0x184] sm:$0xf]  ;;  %v1086_v18 = vld [vmem:[%s2013_s1 + $0x188] sm:$0xf0] }
  0x48   :  { %667 = vmatpush.bf16.msra.mxu0 %v1137_v47  ;;  %v1161_v16 = vor.u32 %v1317_v13, %v1158_v14  ;;  %v1315_v20 = vld [vmem:[%s2013_s1 + $0x204] sm:$0xf]  ;;  %v1150_v21 = vld [vmem:[%s2013_s1 + $0x208] sm:$0xf0]  ;;  %v1089_v22 = vor.u32 %v1299_v17, %v1086_v18  ;;  %v1338_v24 = vld [vmem:[%s2016_s4 + $0x38] sm:$0xff]  ;;  %vm777_vm4 = vcmask 1041409  }
  0x49   :  { %681 = vmatpush.bf16.msra.mxu1 %v1201_v48  ;;  %v1153_v23 = vor.u32 %v1315_v20, %v1150_v21  ;;  %846 = vmatpush.bf16.msra.mxu2 %v1338_v24  ;;  %v1337_v25 = vld [vmem:[%s2016_s4 + $0x30] sm:$0xff]  ;;  %v1336_v27 = vld [vmem:[%s2016_s4 + $0x28] sm:$0xff]  ;;  %v1334_v29 = vld [vmem:[%s2016_s4 + $0x18] sm:$0xff]  ;;  %vm720_vm5 = vcmask 261120   ;;  %s1369_s30 = smov [#allocation2]   ;;  %s881_s9 = sshll.u32 %s2018_s6, 4  ;;  %s882_s9 = int_to_ptr.hbm [resolvable:$true] %s881_s9 }
  0x4a   :  { %v1333_v1 = vld [vmem:[%s2016_s4 + $0x10] sm:$0xff]  ;;  %v1979_v33 = vld [vmem:[%s2014_s2] sm:$0x3]  ;;  %v1332_v35 = vld [vmem:[%s2016_s4 + $0x8] sm:$0xff]  ;;  %s879_s7 = sshll.u32 %s1369_s30, 4  ;;  %vm872_vm6 = vcmask 41984   ;;  %s880_s7 = int_to_ptr.vmem [resolvable:$true] %s879_s7 }
  0x4b   :  { %v696_v38 = vperm.slane %v1979_v33, 0  ;;  %v1331_v41 = vld [vmem:[%s2016_s4] sm:$0xff]  ;;  %v697_v21 = vperm.slane %v1979_v33, 1 }
  0x4c   :  { %668 = vmatpush.bf16.msra.mxu0 %v1129_v53  ;;  %v708_v46 = vld [vmem:[%s2015_s3] sm:$0xff] }
  0x4d   :  { %682 = vmatpush.bf16.msra.mxu1 %v1193_v54  ;;  %847 = vmatpush.bf16.msra.mxu2 %v1337_v25  ;;  %v1339_v63 = vld [vmem:[%s2016_s4 + $0x40] sm:$0xff] }
  0x50   :  { %669 = vmatpush.bf16.msra.mxu0 %v1121_v19  ;;  %v1340_v19 = vld [vmem:[%s2016_s4 + $0x48] sm:$0xff] }
  0x51   :  { %683 = vmatpush.bf16.msra.mxu1 %v1185_v59  ;;  %848 = vmatpush.bf16.msra.mxu2 %v1336_v27 }
  0x52   :  { %865 = vmatpush.bf16.msra.mxu3 %v1340_v19 }
  0x54   :  { %670 = vmatpush.bf16.msra.mxu0 %v1113_v3 }
  0x55   :  { %684 = vmatpush.bf16.msra.mxu1 %v1177_v4 }
  0x56   :  { %866 = vmatpush.bf16.msra.mxu3 %v1339_v63 }
  0x58   :  { %671 = vmatpush.bf16.msra.mxu0 %v1105_v9 }
  0x59   :  { %685 = vmatpush.bf16.msra.mxu1 %v1169_v10 }
  0x5c   :  { %672 = vmatpush.bf16.msra.mxu0 %v1097_v15 }
  0x5d   :  { %686 = vmatpush.bf16.msra.mxu1 %v1161_v16 }
  0x60   :  { %673 = vmatpush.bf16.msra.mxu0 %v1089_v22 }
  0x61   :  { %687 = vmatpush.bf16.msra.mxu1 %v1153_v23 }
  0x63   :  { %674 = vmatmul.bf16.vlgmr.msra.gmra.mxu0 %v1746_v34  ;;  %v1335_v34 = vld [vmem:[%s2016_s4 + $0x20] sm:$0xff] }
  0x64   :  { %688 = vmatmul.bf16.vlgmr.msra.gmra.mxu1 %v1872_v43  ;;  %849 = vmatpush.bf16.msra.mxu2 %v1335_v34 }
  0x68   :  { %850 = vmatpush.bf16.msra.mxu2 %v1334_v29  ;;  %v709_v29 = vld [vmem:[%s2015_s3 + $0x8] sm:$0xff] }
  0x6c   :  { %851 = vmatpush.bf16.msra.mxu2 %v1333_v1 }
  0x70   :  { %852 = vmatpush.bf16.msra.mxu2 %v1332_v35 }
  0x74   :  { %853 = vmatpush.bf16.msra.mxu2 %v1331_v41 }
  0xa0   :  { %v563_v26 = vpop.f32.mrf.mxu0 }
  0xa5   :  { %v577_v28 = vpop.f32.mrf.mxu1 }
  0xa6   :  { %v578_v56 = vadd.f32 %v577_v28, %v563_v26 }
  0xa8   :  { %v591_v57 = vpop.f32.mrf.mxu2  ;;  %v565_v61 = vpop.f32.mrf.mxu0 }
  0xa9   :  { %v592_v30 = vadd.f32 %v591_v57, %v578_v56  ;;  %v605_v31 = vpop.f32.mrf.mxu3 }
  0xab   :  { %v606_v36 = vadd.f32 %v605_v31, %v592_v30 }
  0xad   :  { %v579_v32 = vpop.f32.mrf.mxu1 }
  0xae   :  { %v580_v37 = vadd.f32 %v579_v32, %v565_v61 }
  0xb0   :  { %v593_v39 = vpop.f32.mrf.mxu2 }
  0xb1   :  { %v594_v43 = vadd.f32 %v593_v39, %v580_v37  ;;  %v607_v47 = vpop.f32.mrf.mxu3 }
  0xb3   :  { %v608_v50 = vadd.f32 %v607_v47, %v594_v43 }
  0xc0   :  { %v619_v40 = vpop.f32.mrf.mxu0 }
  0xc1   :  { %v620_v42 = vadd.f32 %v619_v40, %v606_v36  ;;  %v633_v58 = vpop.f32.mrf.mxu1 }
  0xc3   :  { %v700_v45 = vadd.f32 %v696_v38, %v620_v42 }
  0xc5   :  { %v704_v48 = vmax.f32 %v700_v45, 0.0 }
  0xc7   :  { %v710_v49 = vadd.f32 %v708_v46, %v704_v48 }
  0xc8   :  { %v621_v51 = vpop.f32.mrf.mxu0  ;;  %v647_v3 = vpop.f32.mrf.mxu2 }
  0xc9   :  { %v714_v52 = vrot.slane %v710_v49, 4  ;;  %v622_v53 = vadd.f32 %v621_v51, %v608_v50  ;;  %v635_v6 = vpop.f32.mrf.mxu1  ;;  %v661_v9 = vpop.f32.mrf.mxu3  ;;  %v648_v10 = vadd.f32 %v647_v3, %v633_v58 }
  0xcb   :  { %v715_v54 = vmax.f32 %v710_v49, %v714_v52  ;;  %v702_v55 = vadd.f32 %v696_v38, %v622_v53  ;;  %v662_v14 = vadd.f32 %v661_v9, %v648_v10 }
  0xcd   :  { %v716_v60 = vrot.slane %v715_v54, 2  ;;  %v706_v44 = vmax.f32 %v702_v55, 0.0 }
  0xcf   :  { %v717_v59 = vmax.f32 %v715_v54, %v716_v60  ;;  %v712_v62 = vadd.f32 %v708_v46, %v706_v44 }
  0xd0   :  { %v649_v16 = vpop.f32.mrf.mxu2 }
  0xd1   :  { %v728_v0 = vrot.slane %v712_v62, 4  ;;  %v718_v2 = vrot.slane %v717_v59, 1  ;;  %v650_v24 = vadd.f32 %v649_v16, %v635_v6  ;;  %v663_v26 = vpop.f32.mrf.mxu3 }
  0xd3   :  { %v729_v4 = vmax.f32 %v712_v62, %v728_v0  ;;  %v719_v7 = vmax.f32 %v717_v59, %v718_v2  ;;  %v664_v56 = vadd.f32 %v663_v26, %v650_v24  ;;  %v1342_v59 = vld [vmem:[%s2017_s5] ss:$0 sm:$0xff] }
  0xd5   :  { %v730_v5 = vrot.slane %v729_v4, 2  ;;  %v741_v12 = vpack.c.bf16 %v719_v7, %v719_v7 }
  0xd7   :  { %v731_v8 = vmax.f32 %v729_v4, %v730_v5  ;;  %v773_v22 = vunpack.c.l.b16 %v741_v12 }
  0xd9   :  { %v732_v11 = vrot.slane %v731_v8, 1 }
  0xdb   :  { %v733_v13 = vmax.f32 %v731_v8, %v732_v11 }
  0xdd   :  { %v743_v15 = vpack.c.bf16 %v733_v13, %v733_v13 }
  0xdf   :  { %v775_v23 = vunpack.c.l.b16 %v743_v15 }
  0xe0   :  { %v675_v17 = vpop.f32.mrf.mxu0 }
  0xe1   :  { %v676_v18 = vadd.f32 %v675_v17, %v662_v14  ;;  %v689_v20 = vpop.f32.mrf.mxu1  ;;  %v778_v27 = vsel %vm777_vm4, %v775_v23, %v773_v22 }
  0xe2   :  { %v780_v28 = vpack.c.b16 %v778_v27, %v778_v27 }
  0xe3   :  { %v690_v25 = vadd.f32 %v689_v20, %v676_v18 }
  0xe4   :  { %854 = vmatmul.bf16.vlgmr.msra.gmra.mxu2 %v780_v28 }
  0xe5   :  { %v701_v34 = vadd.f32 %v697_v21, %v690_v25 }
  0xe7   :  { %v705_v57 = vmax.f32 %v701_v34, 0.0 }
  0xe8   :  { %v677_v61 = vpop.f32.mrf.mxu0 }
  0xe9   :  { %v711_v1 = vadd.f32 %v709_v29, %v705_v57  ;;  %v678_v30 = vadd.f32 %v677_v61, %v664_v56  ;;  %v691_v31 = vpop.f32.mrf.mxu1 }
  0xeb   :  { %v692_v32 = vadd.f32 %v691_v31, %v678_v30  ;;  %v721_v33 = vsel %vm720_vm5, %v711_v1, -inf }
  0xec   :  { %v722_v35 = vrot.slane %v721_v33, 4 }
  0xed   :  { %v703_v36 = vadd.f32 %v697_v21, %v692_v32 }
  0xee   :  { %v723_v37 = vmax.f32 %v721_v33, %v722_v35 }
  0xef   :  { %v707_v38 = vmax.f32 %v703_v36, 0.0 }
  0xf0   :  { %v724_v39 = vrot.slane %v723_v37, 2 }
  0xf1   :  { %v713_v40 = vadd.f32 %v709_v29, %v707_v38 }
  0xf2   :  { %v725_v41 = vmax.f32 %v723_v37, %v724_v39 }
  0xf3   :  { %v734_v42 = vsel %vm720_vm5, %v713_v40, -inf }
  0xf4   :  { %v735_v43 = vrot.slane %v734_v42, 4  ;;  %v726_v45 = vrot.slane %v725_v41, 1 }
  0xf6   :  { %v736_v46 = vmax.f32 %v734_v42, %v735_v43  ;;  %v727_v48 = vmax.f32 %v725_v41, %v726_v45 }
  0xf8   :  { %v737_v47 = vrot.slane %v736_v46, 2  ;;  %v742_v52 = vpack.c.bf16 %v727_v48, %v727_v48 }
  0xfa   :  { %v738_v49 = vmax.f32 %v736_v46, %v737_v47  ;;  %v774_v54 = vunpack.c.l.b16 %v742_v52 }
  0xfc   :  { %v739_v50 = vrot.slane %v738_v49, 1 }
  0xfe   :  { %v740_v51 = vmax.f32 %v738_v49, %v739_v50 }
 0x100   :  { %v744_v53 = vpack.c.bf16 %v740_v51, %v740_v51 }
 0x102   :  { %v776_v55 = vunpack.c.l.b16 %v744_v53 }
 0x104   :  { %v779_v58 = vsel %vm777_vm4, %v776_v55, %v774_v54 }
 0x105   :  { %v781_v60 = vpack.c.b16 %v779_v58, %v779_v58 }
 0x107   :  { %1250 = vmatmul.msk.bf16.vlgmr.msra.gmra.mxu3 %vm720_vm5, %v781_v60 }
 0x167   :  { %v855_v44 = vpop.f32.mrf.mxu2 }
 0x168   :  { %v856_v62 = vadd.f32 %v1342_v59, %v855_v44 }
 0x16f   :  { %v857_v19 = vpop.f32.mrf.mxu2 }
 0x18a   :  { %v868_v63 = vpop.f32.mrf.mxu3 }
 0x18b   :  { %v869_v0 = vadd.f32 %v868_v63, %v856_v62 }
 0x18d   :  { %873 = vst.msk [vmem:[#allocation2] sm:$0x3] %vm872_vm6, %v869_v0 }
 0x18e   :  { %884 = dma.vmem_to_hbm [thread:$0]  %s880_s7, 32, %s882_s9, [#allocation3]  }
 0x192   :  { %v870_v2 = vpop.f32.mrf.mxu3 }
 0x193   :  { %1367 = dma.done.wait [#allocation3], 32  }
 0x194   :  { %1368 = vsyncadd [#allocation3], 4294967264 }
 0x195   :  { %889 = vsyncpa [#allocation3], 1 }

</bundles_post_ra>
